<compile_context>
chip_gen: v7x
topology: tpu7x:2x2x1
jax: 0.10.0
libtpu: 0.0.40
codegen_flags: <defaults>
</compile_context>

<pallas_src>
import functools
import math

import jax
import jax.numpy as jnp
from jax.experimental import pallas as pl
from jax.experimental.pallas import tpu as pltpu


def _round_up(n, m):
    return ((n + m - 1) // m) * m


# ----------------------------------------------------------------------------
# Kernel: one batch tile -> full (padded) output tile.
# ----------------------------------------------------------------------------
def _fused_mlp_kernel(x_ref, y_ref, w1x_ref, w1y_ref, b1_ref, w2_ref, b2_ref,
                      out_ref):
    # First Linear; the torch.cat is expressed as two MXU matmuls accumulating
    # into the same f32 value, so the concatenated activation never exists in HBM.
    h = jnp.dot(x_ref[...], w1x_ref[...], preferred_element_type=jnp.float32)
    h = h + jnp.dot(y_ref[...], w1y_ref[...], preferred_element_type=jnp.float32)
    # Bias + eval-mode BatchNorm (pre-folded into b1/w1), f32 on the VPU.
    h = h + b1_ref[...]
    # TODO(synk): Dropout is identity in eval mode; training-mode dropout
    # (pltpu.prng_random_bits mask) intentionally not implemented.
    h = h.astype(jnp.bfloat16)  # bf16 operands for the second MXU pass
    o = jnp.dot(h, w2_ref[...], preferred_element_type=jnp.float32)
    out_ref[...] = (o + b2_ref[...]).astype(out_ref.dtype)


# ----------------------------------------------------------------------------
# Wrapper
# ----------------------------------------------------------------------------
@functools.partial(jax.jit, static_argnames=("class_num", "block_b"))
def ours_forward(x, y, params, *, class_num, block_b=512):
    """x: (B, input_dim), y: (B, 100) -> (B, class_num). `params` from prepare_params."""
    B = x.shape[0]
    w1x, w1y = params["w1x"], params["w1y"]
    b1, w2, b2 = params["b1"], params["w2"], params["b2"]

    kx, L = w1x.shape          # padded input_dim, hidden width
    ky = w1y.shape[0]          # padded y width (100 -> 128)
    n_pad = w2.shape[1]        # padded class_num (lane-dense 128 multiple)

    # Batch tiling: biggest tile up to block_b, batch padded to a tile multiple.
    tb = min(block_b, _round_up(B, 8))
    b_pad = _round_up(B, tb)

    # Zero-pad activations (batch + contraction dims) and cast to bf16 for MXU.
    x_p = jnp.zeros((b_pad, kx), jnp.bfloat16).at[:B, :x.shape[1]].set(
        x.astype(jnp.bfloat16))
    y_p = jnp.zeros((b_pad, ky), jnp.bfloat16).at[:B, :y.shape[1]].set(
        y.astype(jnp.bfloat16))

    grid = (b_pad // tb,)

    flops = 2 * b_pad * (kx + ky) * L + 2 * b_pad * L * n_pad
    bytes_accessed = (
        (x_p.size + y_p.size) * 2                       # bf16 activations in
        + (w1x.size + w1y.size + w2.size) * 2           # bf16 weights
        + (b1.size + b2.size) * 4                       # f32 biases
        + b_pad * n_pad * 4                             # f32 output
    )

    out = pl.pallas_call(
        _fused_mlp_kernel,
        out_shape=jax.ShapeDtypeStruct((b_pad, n_pad), jnp.float32),
        grid=grid,
        in_specs=[
            pl.BlockSpec((tb, kx), lambda i: (i, 0)),    # x tile (pipelined)
            pl.BlockSpec((tb, ky), lambda i: (i, 0)),    # y tile (pipelined)
            pl.BlockSpec((kx, L), lambda i: (0, 0)),     # w1x resident
            pl.BlockSpec((ky, L), lambda i: (0, 0)),     # w1y resident
            pl.BlockSpec((1, L), lambda i: (0, 0)),      # b1 (BN-folded) resident
            pl.BlockSpec((L, n_pad), lambda i: (0, 0)),  # w2 resident
            pl.BlockSpec((1, n_pad), lambda i: (0, 0)),  # b2 resident
        ],
        out_specs=pl.BlockSpec((tb, n_pad), lambda i: (i, 0)),
        compiler_params=pltpu.CompilerParams(
            dimension_semantics=("parallel",),
            vmem_limit_bytes=32 * 1024 * 1024,
        ),
        cost_estimate=pl.CostEstimate(
            flops=flops, transcendentals=0, bytes_accessed=bytes_accessed),
    )(x_p, y_p, w1x, w1y, b1, w2, b2)

    return out[:B, :class_num]


# ----------------------------------------------------------------------------
# Parameter init (mirrors Ours.init_fc / Ours.init_classifier) and prep/folding
# ----------------------------------------------------------------------------
def init_params(key, input_dim, class_num, linear=512):
    """Raw (PyTorch-equivalent) parameters, eval-mode BN stats."""
    d_in = input_dim + 100
    k1, k2, k3 = jax.random.split(key, 3)

    # fc Linear: kaiming_normal_(mode='fan_out', a=0) -> std = sqrt(2 / out_features);
    # stored transposed as (in, out).
    std1 = math.sqrt(2.0 / linear)
    w1 = jax.random.normal(k1, (d_in, linear), jnp.float32) * std1
    b1 = jnp.zeros((1, linear), jnp.float32)

    # BatchNorm1d: gamma ~ N(1, 0.02), beta = 0; eval stats mean=0, var=1.
    eps = 1e-5
    gamma = 1.0 + 0.02 * jax.random.normal(k2, (linear,), jnp.float32)
    beta = jnp.zeros((linear,), jnp.float32)
    running_mean = jnp.zeros((linear,), jnp.float32)
    running_var = jnp.ones((linear,), jnp.float32)
    inv_std = gamma / jnp.sqrt(running_var + eps)
    bn_scale = inv_std.reshape(1, linear)
    bn_shift = (beta - running_mean * inv_std).reshape(1, linear)

    # classifier Linear: weight ~ N(0, 0.001), bias = 0; stored transposed.
    w2 = 0.001 * jax.random.normal(k3, (linear, class_num), jnp.float32)
    b2 = jnp.zeros((1, class_num), jnp.float32)

    return dict(w1=w1, b1=b1, bn_scale=bn_scale, bn_shift=bn_shift, w2=w2, b2=b2)


def prepare_params(raw, input_dim, y_dim=100):
    """Fold eval-mode BN into Linear1, split w1 for the in-kernel concat,
    zero-pad contraction / output dims to 128 multiples, cast weights to bf16."""
    w1, b1 = raw["w1"], raw["b1"]
    scale, shift = raw["bn_scale"], raw["bn_shift"]
    w2, b2 = raw["w2"], raw["b2"]
    linear = w1.shape[1]
    class_num = w2.shape[1]

    # Fold BN: y = (x@w1 + b1) * scale + shift == x @ (w1*scale) + (b1*scale + shift)
    w1f = w1 * scale
    b1f = b1 * scale + shift

    kx = _round_up(input_dim, 128)
    ky = _round_up(y_dim, 128)
    n_pad = _round_up(class_num, 128)

    w1x = jnp.zeros((kx, linear), jnp.float32).at[:input_dim].set(w1f[:input_dim])
    w1y = jnp.zeros((ky, linear), jnp.float32).at[:y_dim].set(w1f[input_dim:])
    w2p = jnp.zeros((linear, n_pad), jnp.float32).at[:, :class_num].set(w2)
    b2p = jnp.zeros((1, n_pad), jnp.float32).at[:, :class_num].set(b2)

    return dict(
        w1x=w1x.astype(jnp.bfloat16),
        w1y=w1y.astype(jnp.bfloat16),
        b1=b1f,                       # f32
        w2=w2p.astype(jnp.bfloat16),
        b2=b2p,                       # f32
    )


# ----------------------------------------------------------------------------
# References
# ----------------------------------------------------------------------------
def reference_forward_f32(x, y, raw):
    """Pure f32 reference of the PyTorch module (eval mode)."""
    xy = jnp.concatenate([x, y], axis=1).astype(jnp.float32)
    h = xy @ raw["w1"] + raw["b1"]
    h = h * raw["bn_scale"] + raw["bn_shift"]
    return h @ raw["w2"] + raw["b2"]


def reference_forward_matched(x, y, prep, input_dim, class_num):
    """Reference with the same numerics as the kernel (bf16 MXU operands, f32 acc)."""
    y_dim = y.shape[1]
    xb = x.astype(jnp.bfloat16)
    yb = y.astype(jnp.bfloat16)
    h = jnp.dot(xb, prep["w1x"][:input_dim], preferred_element_type=jnp.float32)
    h = h + jnp.dot(yb, prep["w1y"][:y_dim], preferred_element_type=jnp.float32)
    h = h + prep["b1"]
    h = h.astype(jnp.bfloat16)
    o = jnp.dot(h, prep["w2"], preferred_element_type=jnp.float32) + prep["b2"]
    return o[:, :class_num]


if __name__ == "__main__":
    # Small shapes consistent with the module: input_dim=28 -> d_in=128.
    B, input_dim, class_num, linear = 8, 28, 16, 512

    key = jax.random.PRNGKey(0)
    k_x, k_y, k_p = jax.random.split(key, 3)
    x = jax.random.normal(k_x, (B, input_dim), jnp.float32)
    y = jax.random.normal(k_y, (B, 100), jnp.float32)

    raw = init_params(k_p, input_dim, class_num, linear)
    prep = prepare_params(raw, input_dim)

    out = ours_forward(x, y, prep, class_num=class_num)
    out = jax.block_until_ready(out)

    ref_matched = reference_forward_matched(x, y, prep, input_dim, class_num)
    ref_f32 = reference_forward_f32(x, y, raw)

    assert out.shape == (B, class_num)
    # Tight check vs. a reference with identical (bf16-operand) numerics.
    assert jnp.allclose(out, ref_matched, atol=1e-4, rtol=1e-4)
    # Loose check vs. the pure-f32 PyTorch semantics (bf16 operand rounding only).
    assert jnp.allclose(out, ref_f32, atol=3e-2, rtol=3e-2)

    print("KERNEL_OK")
</pallas_src>

<mosaic_0001>
module attributes {stable_mosaic.version = 11 : i64} {
  func.func @_fused_mlp_kernel(%arg0: i32, %arg1: memref<8x128xbf16, #tpu.memory_space<vmem>>, %arg2: memref<8x128xbf16, #tpu.memory_space<vmem>>, %arg3: memref<128x512xbf16, #tpu.memory_space<vmem>>, %arg4: memref<128x512xbf16, #tpu.memory_space<vmem>>, %arg5: memref<1x512xf32, #tpu.memory_space<vmem>>, %arg6: memref<512x128xbf16, #tpu.memory_space<vmem>>, %arg7: memref<1x128xf32, #tpu.memory_space<vmem>>, %arg8: memref<8x128xf32, #tpu.memory_space<vmem>>) attributes {dimension_semantics = [#tpu.dimension_semantics<parallel>], iteration_bounds = array<i64: 1>, scalar_prefetch = 0 : i64, scratch_operands = 0 : i64, tpu.core_type = #tpu.core_type<tc>, window_params = [{transform_indices = @transform_0, window_bounds = array<i64: 8, 128>}, {transform_indices = @transform_1, window_bounds = array<i64: 8, 128>}, {pipeline_mode = #tpu.pipeline_mode<synchronous>, transform_indices = @transform_2, window_bounds = array<i64: 128, 512>}, {pipeline_mode = #tpu.pipeline_mode<synchronous>, transform_indices = @transform_3, window_bounds = array<i64: 128, 512>}, {pipeline_mode = #tpu.pipeline_mode<synchronous>, transform_indices = @transform_4, window_bounds = array<i64: 1, 512>}, {pipeline_mode = #tpu.pipeline_mode<synchronous>, transform_indices = @transform_5, window_bounds = array<i64: 512, 128>}, {pipeline_mode = #tpu.pipeline_mode<synchronous>, transform_indices = @transform_6, window_bounds = array<i64: 1, 128>}, {transform_indices = @transform_7, window_bounds = array<i64: 8, 128>}]} {
    %c0 = arith.constant 0 : index
    %c0_0 = arith.constant 0 : index
    %0 = vector.load %arg1[%c0, %c0_0] : memref<8x128xbf16, #tpu.memory_space<vmem>>, vector<8x128xbf16>
    %c0_1 = arith.constant 0 : index
    %c0_2 = arith.constant 0 : index
    %1 = vector.load %arg3[%c0_1, %c0_2] : memref<128x512xbf16, #tpu.memory_space<vmem>>, vector<128x512xbf16>
    %cst = arith.constant dense<0.000000e+00> : vector<8x512xf32>
    %2 = tpu.matmul %0, %1, %cst {dimension_numbers = #tpu.dot_dimension_numbers<[1], [0], [0], [1], [0, 0, 1, 1], [], []>} : vector<8x128xbf16>, vector<128x512xbf16>, vector<8x512xf32> -> vector<8x512xf32>
    %c0_3 = arith.constant 0 : index
    %c0_4 = arith.constant 0 : index
    %3 = vector.load %arg2[%c0_3, %c0_4] : memref<8x128xbf16, #tpu.memory_space<vmem>>, vector<8x128xbf16>
    %c0_5 = arith.constant 0 : index
    %c0_6 = arith.constant 0 : index
    %4 = vector.load %arg4[%c0_5, %c0_6] : memref<128x512xbf16, #tpu.memory_space<vmem>>, vector<128x512xbf16>
    %cst_7 = arith.constant dense<0.000000e+00> : vector<8x512xf32>
    %5 = tpu.matmul %3, %4, %cst_7 {dimension_numbers = #tpu.dot_dimension_numbers<[1], [0], [0], [1], [0, 0, 1, 1], [], []>} : vector<8x128xbf16>, vector<128x512xbf16>, vector<8x512xf32> -> vector<8x512xf32>
    %6 = arith.addf %2, %5 : vector<8x512xf32>
    %c0_8 = arith.constant 0 : index
    %c0_9 = arith.constant 0 : index
    %7 = vector.load %arg5[%c0_8, %c0_9] : memref<1x512xf32, #tpu.memory_space<vmem>>, vector<1x512xf32>
    %8 = vector.broadcast %7 : vector<1x512xf32> to vector<8x512xf32>
    %9 = arith.addf %6, %8 : vector<8x512xf32>
    %10 = arith.truncf %9 : vector<8x512xf32> to vector<8x512xbf16>
    %c0_10 = arith.constant 0 : index
    %c0_11 = arith.constant 0 : index
    %11 = vector.load %arg6[%c0_10, %c0_11] : memref<512x128xbf16, #tpu.memory_space<vmem>>, vector<512x128xbf16>
    %cst_12 = arith.constant dense<0.000000e+00> : vector<8x128xf32>
    %12 = tpu.matmul %10, %11, %cst_12 {dimension_numbers = #tpu.dot_dimension_numbers<[1], [0], [0], [1], [0, 0, 1, 1], [], []>} : vector<8x512xbf16>, vector<512x128xbf16>, vector<8x128xf32> -> vector<8x128xf32>
    %c0_13 = arith.constant 0 : index
    %c0_14 = arith.constant 0 : index
    %13 = vector.load %arg7[%c0_13, %c0_14] : memref<1x128xf32, #tpu.memory_space<vmem>>, vector<1x128xf32>
    %14 = vector.broadcast %13 : vector<1x128xf32> to vector<8x128xf32>
    %15 = arith.addf %12, %14 : vector<8x128xf32>
    %c0_15 = arith.constant 0 : index
    %c0_16 = arith.constant 0 : index
    %16 = vector.load %arg8[%c0_15, %c0_16] : memref<8x128xf32, #tpu.memory_space<vmem>>, vector<8x128xf32>
    tpu.vector_store %arg8[%c0_15, %c0_16], %15 {strides = array<i32>} : memref<8x128xf32, #tpu.memory_space<vmem>>, vector<8x128xf32>,
    return
  }
  func.func @transform_0(%arg0: i32) -> (i32, i32) {
    %c0_i32 = arith.constant 0 : i32
    %c0_i32_0 = arith.constant 0 : i32
    return %arg0, %c0_i32 : i32, i32
  }
  func.func @transform_1(%arg0: i32) -> (i32, i32) {
    %c0_i32 = arith.constant 0 : i32
    %c0_i32_0 = arith.constant 0 : i32
    return %arg0, %c0_i32 : i32, i32
  }
  func.func @transform_2(%arg0: i32) -> (i32, i32) {
    %c0_i32 = arith.constant 0 : i32
    %c0_i32_0 = arith.constant 0 : i32
    %c0_i32_1 = arith.constant 0 : i32
    return %c0_i32, %c0_i32_0 : i32, i32
  }
  func.func @transform_3(%arg0: i32) -> (i32, i32) {
    %c0_i32 = arith.constant 0 : i32
    %c0_i32_0 = arith.constant 0 : i32
    %c0_i32_1 = arith.constant 0 : i32
    return %c0_i32, %c0_i32_0 : i32, i32
  }
  func.func @transform_4(%arg0: i32) -> (i32, i32) {
    %c0_i32 = arith.constant 0 : i32
    %c0_i32_0 = arith.constant 0 : i32
    %c0_i32_1 = arith.constant 0 : i32
    return %c0_i32, %c0_i32_0 : i32, i32
  }
  func.func @transform_5(%arg0: i32) -> (i32, i32) {
    %c0_i32 = arith.constant 0 : i32
    %c0_i32_0 = arith.constant 0 : i32
    %c0_i32_1 = arith.constant 0 : i32
    return %c0_i32, %c0_i32_0 : i32, i32
  }
  func.func @transform_6(%arg0: i32) -> (i32, i32) {
    %c0_i32 = arith.constant 0 : i32
    %c0_i32_0 = arith.constant 0 : i32
    %c0_i32_1 = arith.constant 0 : i32
    return %c0_i32, %c0_i32_0 : i32, i32
  }
  func.func @transform_7(%arg0: i32) -> (i32, i32) {
    %c0_i32 = arith.constant 0 : i32
    %c0_i32_0 = arith.constant 0 : i32
    return %arg0, %c0_i32 : i32, i32
  }
}

</mosaic_0001>

<bundles_post_ra>
// kernel: ours_forward.1
= control target key start
LH: loop header
LB: loop body
LE: loop exit
PB: predicated region body
PF: predicated region fallthrough
CT: control target
= control target key end

     0   :  { %12 = vsyncpa [#allocation3], 0  ;;  %s1501_s0 = inlined_call_operand.vmem [shape: bf16[8,128], index: 0, kind: input, shape index: {}]   ;;  %s1502_s1 = inlined_call_operand.vmem [shape: bf16[8,128], index: 1, kind: input, shape index: {}]   ;;  %s1503_s2 = inlined_call_operand.hbm [shape: bf16[128,512], index: 2, kind: input, shape index: {}]   ;;  %s1504_s3 = inlined_call_operand.hbm [shape: bf16[128,512], index: 3, kind: input, shape index: {}]   ;;  %s1505_s4 = inlined_call_operand.vmem [shape: f32[1,512], index: 4, kind: input, shape index: {}]   ;;  %s1506_s5 = inlined_call_operand.hbm [shape: bf16[512,128], index: 5, kind: input, shape index: {}]   ;;  %s1507_s6 = inlined_call_operand.vmem [shape: f32[1,128], index: 6, kind: input, shape index: {}]   ;;  %s1508_s7 = inlined_call_operand.hbm [shape: f32[8,128], index: 7, kind: output, shape index: {}]  }
   0x1   :  { %13 = vsyncpa [#allocation6], 0 }
   0x2   :  { %14 = vsyncpa [#allocation4], 0  ;;  %s1381_s24 = smov [#allocation5]   ;;  %s1382_s26 = smov [#allocation2]  }
   0x3   :  { %s36_s25 = sshll.u32 %s1381_s24, 4  ;;  %s24_s27 = sshll.u32 %s1382_s26, 4  ;;  %s37_s25 = int_to_ptr.vmem [resolvable:$true] %s36_s25  ;;  %s1430_s27 = int_to_ptr.vmem [resolvable:$true] %s24_s27 }
   0x4   :  { %s1287_s30 = scalar_lea.hbm %s1504_s3, 4096 }
   0x5   :  { %p1288_p0 = scmp.ne.s32.totalorder %s1504_s3, %s1287_s30  ;;  %p1291_p1 = scmp.lt.u32.totalorder %s1287_s30, %s1504_s3 }
   0x7   :  { %p1293_p2 = pnand %p1291_p1, %p1288_p0 }
   0x9   :  { %1296 = shalt.err (!%p1293_p2)
}
   0xa   :  { %s1297_s12 = scalar_lea.vmem %s37_s25, 4096  ;;  %p1302_p4 = scmp.lt.s32.totalorder %s37_s25, %s37_s25 }
   0xb   :  { %p1298_p3 = scmp.ne.s32.totalorder %s37_s25, %s1297_s12  ;;  %p1303_p5 = scmp.lt.s32.totalorder %s1297_s12, %s1297_s12 }
   0xd   :  { %p1304_p6 = por %p1303_p5, %p1302_p4 }
   0xf   :  { %p1305_p7 = pnand %p1304_p6, %p1298_p3 }
  0x11   :  { %1308 = shalt.err (!%p1305_p7)
}
  0x12   :  { %s1383_s13 = smov 256   ;;  %s1384_s14 = smov 16  }
  0x13   :  { %42 = dma.hbm_to_vmem [thread:$0]  %s1504_s3, 4096, %s37_s25, [#allocation6], %s1383_s13, %s1383_s13, %s1384_s14  }
  0x14   :  { %s1309_s19 = scalar_lea.hbm %s1503_s2, 4096 }
  0x15   :  { %p1310_p8 = scmp.ne.s32.totalorder %s1503_s2, %s1309_s19  ;;  %p1313_p9 = scmp.lt.u32.totalorder %s1309_s19, %s1503_s2 }
  0x17   :  { %p1315_p10 = pnand %p1313_p9, %p1310_p8 }
  0x19   :  { %1318 = shalt.err (!%p1315_p10)
}
  0x1a   :  { %s1319_s24 = scalar_lea.vmem %s1430_s27, 4096  ;;  %p1324_p12 = scmp.lt.s32.totalorder %s1430_s27, %s1430_s27 }
  0x1b   :  { %p1320_p11 = scmp.ne.s32.totalorder %s1430_s27, %s1319_s24  ;;  %p1325_p13 = scmp.lt.s32.totalorder %s1319_s24, %s1319_s24 }
  0x1d   :  { %p1326_p0 = por %p1325_p13, %p1324_p12 }
  0x1f   :  { %p1327_p1 = pnand %p1326_p0, %p1320_p11 }
  0x21   :  { %1330 = shalt.err (!%p1327_p1)
}
  0x22   :  { %30 = dma.hbm_to_vmem [thread:$0]  %s1503_s2, 4096, %s1430_s27, [#allocation3], %s1383_s13, %s1383_s13, %s1384_s14  }
  0x23   :  { %s1385_s26 = smov [#allocation7]   ;;  %s1331_s8 = scalar_lea.hbm %s1506_s5, 4096 }
  0x24   :  { %s50_s28 = sshll.u32 %s1385_s26, 4  ;;  %p1332_p2 = scmp.ne.s32.totalorder %s1506_s5, %s1331_s8  ;;  %s51_s28 = int_to_ptr.vmem [resolvable:$true] %s50_s28 }
  0x25   :  { %p1335_p3 = scmp.lt.u32.totalorder %s1331_s8, %s1506_s5 }
  0x27   :  { %p1337_p4 = pnand %p1335_p3, %p1332_p2 }
  0x29   :  { %1340 = shalt.err (!%p1337_p4)
}
  0x2a   :  { %s1341_s15 = scalar_lea.vmem %s51_s28, 4096  ;;  %p1346_p6 = scmp.lt.s32.totalorder %s51_s28, %s51_s28 }
  0x2b   :  { %p1342_p5 = scmp.ne.s32.totalorder %s51_s28, %s1341_s15  ;;  %p1347_p7 = scmp.lt.s32.totalorder %s1341_s15, %s1341_s15 }
  0x2d   :  { %p1348_p8 = por %p1347_p7, %p1346_p6 }
  0x2f   :  { %p1349_p9 = pnand %p1348_p8, %p1342_p5 }
  0x31   :  { %1352 = shalt.err (!%p1349_p9)
}
  0x32   :  { %s1386_s2 = smov 64   ;;  %s1387_s27 = smov 4  }
  0x33   :  { %56 = dma.hbm_to_vmem [thread:$0]  %s1506_s5, 4096, %s51_s28, [#allocation6], %s1386_s2, %s1386_s2, %s1387_s27  }
  0x34   :  { %1375 = dma.done.wait [#allocation3], 4096  }
  0x35   :  { %1376 = vsyncadd [#allocation3], 4294963200 }
  0x36   :  { %1377 = dma.done.wait [#allocation6], 8192  }
  0x37   :  { %1378 = vsyncadd [#allocation6], 4294959104  ;;  %v1388_v0 = vmov 0   ;;  %v1159_v1 = vld [vmem:[#allocation5 + $0x4] ss:$16 sps:$4 sm:$0xff]   ;;  %s1389_s20 = smov [#allocation8]  }
  0x38   :  { %327 = vmatprep.mubr.bf16.mxu0 %v1388_v0  ;;  %368 = vmatprep.mubr.bf16.mxu1 %v1388_v0  ;;  %v1161_v2 = vld [vmem:[#allocation5 + $0xc] ss:$16 sps:$4 sm:$0xff]   ;;  %v1163_v3 = vld [vmem:[#allocation5] ss:$16 sps:$4 sm:$0xff]   ;;  %v1164_v4 = vld [vmem:[#allocation5 + $0x8] ss:$16 sps:$4 sm:$0xff]  }
  0x39   :  { %295 = vmatprep.subr.bf16.mxu0 %v1159_v1  ;;  %336 = vmatprep.subr.bf16.mxu1 %v1161_v2  ;;  %v1165_v5 = vld [vmem:[#allocation5 + $0x24] ss:$16 sps:$4 sm:$0xff]   ;;  %v1167_v6 = vld [vmem:[#allocation5 + $0x2c] ss:$16 sps:$4 sm:$0xff]   ;;  %v1169_v7 = vld [vmem:[#allocation5 + $0x20] ss:$16 sps:$4 sm:$0xff]  }
  0x3a   :  { %296 = vmatpush1.bf16.msra.mxu0 %v1163_v3  ;;  %337 = vmatpush1.bf16.msra.mxu1 %v1164_v4  ;;  %v1170_v8 = vld [vmem:[#allocation5 + $0x28] ss:$16 sps:$4 sm:$0xff]   ;;  %v1171_v9 = vld [vmem:[#allocation5 + $0x44] ss:$16 sps:$4 sm:$0xff]   ;;  %v1173_v10 = vld [vmem:[#allocation5 + $0x4c] ss:$16 sps:$4 sm:$0xff]  }
  0x3b   :  { %297 = vmatprep.subr.bf16.mxu0 %v1165_v5  ;;  %338 = vmatprep.subr.bf16.mxu1 %v1167_v6  ;;  %v1175_v11 = vld [vmem:[#allocation5 + $0x40] ss:$16 sps:$4 sm:$0xff]   ;;  %v1176_v12 = vld [vmem:[#allocation5 + $0x48] ss:$16 sps:$4 sm:$0xff]   ;;  %v1177_v13 = vld [vmem:[#allocation5 + $0x64] ss:$16 sps:$4 sm:$0xff]  }
  0x3c   :  { %v1179_v14 = vld [vmem:[#allocation5 + $0x6c] ss:$16 sps:$4 sm:$0xff]   ;;  %v1181_v15 = vld [vmem:[#allocation5 + $0x60] ss:$16 sps:$4 sm:$0xff]   ;;  %v1182_v16 = vld [vmem:[#allocation5 + $0x68] ss:$16 sps:$4 sm:$0xff]  }
  0x3d   :  { %v1183_v17 = vld [vmem:[#allocation5 + $0x84] ss:$16 sps:$4 sm:$0xff]   ;;  %v1185_v18 = vld [vmem:[#allocation5 + $0x8c] ss:$16 sps:$4 sm:$0xff]   ;;  %v1187_v19 = vld [vmem:[#allocation5 + $0x80] ss:$16 sps:$4 sm:$0xff]  }
  0x3e   :  { %298 = vmatpush1.bf16.msra.mxu0 %v1169_v7  ;;  %339 = vmatpush1.bf16.msra.mxu1 %v1170_v8  ;;  %v1188_v20 = vld [vmem:[#allocation5 + $0x88] ss:$16 sps:$4 sm:$0xff]   ;;  %v1189_v21 = vld [vmem:[#allocation5 + $0xa4] ss:$16 sps:$4 sm:$0xff]   ;;  %v1191_v22 = vld [vmem:[#allocation5 + $0xac] ss:$16 sps:$4 sm:$0xff]  }
  0x3f   :  { %299 = vmatprep.subr.bf16.mxu0 %v1171_v9  ;;  %340 = vmatprep.subr.bf16.mxu1 %v1173_v10  ;;  %v1193_v23 = vld [vmem:[#allocation5 + $0xa0] ss:$16 sps:$4 sm:$0xff]   ;;  %v1194_v24 = vld [vmem:[#allocation5 + $0xa8] ss:$16 sps:$4 sm:$0xff]   ;;  %v1195_v25 = vld [vmem:[#allocation5 + $0xc4] ss:$16 sps:$4 sm:$0xff]  }
  0x40   :  { %v1197_v26 = vld [vmem:[#allocation5 + $0xcc] ss:$16 sps:$4 sm:$0xff]   ;;  %v1199_v27 = vld [vmem:[#allocation5 + $0xc0] ss:$16 sps:$4 sm:$0xff]   ;;  %v1200_v28 = vld [vmem:[#allocation5 + $0xc8] ss:$16 sps:$4 sm:$0xff]  }
  0x41   :  { %v1201_v29 = vld [vmem:[#allocation5 + $0xe4] ss:$16 sps:$4 sm:$0xff]   ;;  %v1203_v30 = vld [vmem:[#allocation5 + $0xec] ss:$16 sps:$4 sm:$0xff]   ;;  %v1205_v31 = vld [vmem:[#allocation5 + $0xe0] ss:$16 sps:$4 sm:$0xff]  }
  0x42   :  { %300 = vmatpush1.bf16.msra.mxu0 %v1175_v11  ;;  %341 = vmatpush1.bf16.msra.mxu1 %v1176_v12  ;;  %v1206_v32 = vld [vmem:[#allocation5 + $0xe8] ss:$16 sps:$4 sm:$0xff]   ;;  %v1209_v33 = vld [vmem:[#allocation2 + $0x4] ss:$16 sps:$4 sm:$0xff]   ;;  %v1212_v34 = vld [vmem:[#allocation2 + $0xc] ss:$16 sps:$4 sm:$0xff]  }
  0x43   :  { %301 = vmatprep.subr.bf16.mxu0 %v1177_v13  ;;  %342 = vmatprep.subr.bf16.mxu1 %v1179_v14  ;;  %v102_v35 = vld [vmem:[%s1502_s1] sm:$0xf]  ;;  %v1210_v37 = vld [vmem:[#allocation2 + $0x8] ss:$16 sps:$4 sm:$0xff]   ;;  %v1215_v38 = vld [vmem:[#allocation2 + $0x24] ss:$16 sps:$4 sm:$0xff]  }
  0x44   :  { %v1207_v36 = vld [vmem:[#allocation2] ss:$16 sps:$4 sm:$0xff]   ;;  %v1218_v39 = vld [vmem:[#allocation2 + $0x2c] ss:$16 sps:$4 sm:$0xff]   ;;  %v1216_v41 = vld [vmem:[#allocation2 + $0x28] ss:$16 sps:$4 sm:$0xff]  }
  0x45   :  { %v1213_v40 = vld [vmem:[#allocation2 + $0x20] ss:$16 sps:$4 sm:$0xff]   ;;  %v1221_v42 = vld [vmem:[#allocation2 + $0x44] ss:$16 sps:$4 sm:$0xff]   ;;  %v1224_v43 = vld [vmem:[#allocation2 + $0x4c] ss:$16 sps:$4 sm:$0xff]  }
  0x46   :  { %302 = vmatpush1.bf16.msra.mxu0 %v1181_v15  ;;  %343 = vmatpush1.bf16.msra.mxu1 %v1182_v16  ;;  %v1219_v44 = vld [vmem:[#allocation2 + $0x40] ss:$16 sps:$4 sm:$0xff]   ;;  %v1222_v45 = vld [vmem:[#allocation2 + $0x48] ss:$16 sps:$4 sm:$0xff]   ;;  %v1227_v46 = vld [vmem:[#allocation2 + $0x64] ss:$16 sps:$4 sm:$0xff]  }
  0x47   :  { %303 = vmatprep.subr.bf16.mxu0 %v1183_v17  ;;  %344 = vmatprep.subr.bf16.mxu1 %v1185_v18  ;;  %v1230_v47 = vld [vmem:[#allocation2 + $0x6c] ss:$16 sps:$4 sm:$0xff]   ;;  %v1225_v48 = vld [vmem:[#allocation2 + $0x60] ss:$16 sps:$4 sm:$0xff]   ;;  %v1228_v49 = vld [vmem:[#allocation2 + $0x68] ss:$16 sps:$4 sm:$0xff]  }
  0x48   :  { %v1233_v50 = vld [vmem:[#allocation2 + $0x84] ss:$16 sps:$4 sm:$0xff]   ;;  %v1236_v51 = vld [vmem:[#allocation2 + $0x8c] ss:$16 sps:$4 sm:$0xff]   ;;  %v1231_v52 = vld [vmem:[#allocation2 + $0x80] ss:$16 sps:$4 sm:$0xff]  }
  0x49   :  { %v1234_v53 = vld [vmem:[#allocation2 + $0x88] ss:$16 sps:$4 sm:$0xff]   ;;  %v1239_v54 = vld [vmem:[#allocation2 + $0xa4] ss:$16 sps:$4 sm:$0xff]   ;;  %v1242_v55 = vld [vmem:[#allocation2 + $0xac] ss:$16 sps:$4 sm:$0xff]  }
  0x4a   :  { %304 = vmatpush1.bf16.msra.mxu0 %v1187_v19  ;;  %345 = vmatpush1.bf16.msra.mxu1 %v1188_v20  ;;  %v1237_v56 = vld [vmem:[#allocation2 + $0xa0] ss:$16 sps:$4 sm:$0xff]   ;;  %v1240_v57 = vld [vmem:[#allocation2 + $0xa8] ss:$16 sps:$4 sm:$0xff]   ;;  %v1245_v58 = vld [vmem:[#allocation2 + $0xc4] ss:$16 sps:$4 sm:$0xff]  }
  0x4b   :  { %305 = vmatprep.subr.bf16.mxu0 %v1189_v21  ;;  %346 = vmatprep.subr.bf16.mxu1 %v1191_v22  ;;  %v1248_v59 = vld [vmem:[#allocation2 + $0xcc] ss:$16 sps:$4 sm:$0xff]   ;;  %v1243_v60 = vld [vmem:[#allocation2 + $0xc0] ss:$16 sps:$4 sm:$0xff]   ;;  %v1246_v61 = vld [vmem:[#allocation2 + $0xc8] ss:$16 sps:$4 sm:$0xff]  }
  0x4c   :  { %v1251_v62 = vld [vmem:[#allocation2 + $0xe4] ss:$16 sps:$4 sm:$0xff]   ;;  %v1254_v63 = vld [vmem:[#allocation2 + $0xec] ss:$16 sps:$4 sm:$0xff]   ;;  %v1252_v1 = vld [vmem:[#allocation2 + $0xe8] ss:$16 sps:$4 sm:$0xff]  }
  0x4d   :  { %v69_v2 = vld [vmem:[%s1501_s0] sm:$0xf]  ;;  %v1259_v7 = vld [vmem:[#allocation7 + $0x48] sm:$0xff]   ;;  %v1263_v11 = vld [vmem:[#allocation7 + $0x50] sm:$0xff]   ;;  %s999_s21 = sshll.u32 %s1389_s20, 4  ;;  %s1000_s21 = int_to_ptr.vmem [resolvable:$true] %s999_s21 }
  0x4e   :  { %306 = vmatpush1.bf16.msra.mxu0 %v1193_v23  ;;  %347 = vmatpush1.bf16.msra.mxu1 %v1194_v24  ;;  %v1255_v3 = vld [vmem:[#allocation7 + $0x40] sm:$0xff]   ;;  %v1260_v8 = vld [vmem:[#allocation7 + $0xc8] sm:$0xff]   ;;  %v1264_v12 = vld [vmem:[#allocation7 + $0xd0] sm:$0xff]   ;;  %s1353_s22 = scalar_lea.vmem %s1000_s21, 128  ;;  %p1358_p11 = scmp.lt.s32.totalorder %s1000_s21, %s1000_s21 }
  0x4f   :  { %307 = vmatprep.subr.bf16.mxu0 %v1195_v25  ;;  %348 = vmatprep.subr.bf16.mxu1 %v1197_v26  ;;  %v1256_v4 = vld [vmem:[#allocation7 + $0xc0] sm:$0xff]   ;;  %v1261_v9 = vld [vmem:[#allocation7 + $0x8] sm:$0xff]   ;;  %v1265_v13 = vld [vmem:[#allocation7 + $0x10] sm:$0xff]   ;;  %p1354_p10 = scmp.ne.s32.totalorder %s1000_s21, %s1353_s22  ;;  %p1359_p12 = scmp.lt.s32.totalorder %s1353_s22, %s1353_s22 }
  0x50   :  { %v1257_v5 = vld [vmem:[#allocation7] sm:$0xff]   ;;  %v1262_v10 = vld [vmem:[#allocation7 + $0x88] sm:$0xff]   ;;  %v1266_v14 = vld [vmem:[#allocation7 + $0x90] sm:$0xff]  }
  0x51   :  { %v1258_v6 = vld [vmem:[#allocation7 + $0x80] sm:$0xff]   ;;  %v1267_v15 = vld [vmem:[#allocation7 + $0x58] sm:$0xff]   ;;  %v1275_v23 = vld [vmem:[#allocation7 + $0x68] sm:$0xff]   ;;  %p1360_p13 = por %p1359_p12, %p1358_p11 }
  0x52   :  { %308 = vmatpush1.bf16.msra.mxu0 %v1199_v27  ;;  %349 = vmatpush1.bf16.msra.mxu1 %v1200_v28  ;;  %v1268_v16 = vld [vmem:[#allocation7 + $0xd8] sm:$0xff]   ;;  %v1271_v19 = vld [vmem:[#allocation7 + $0x60] sm:$0xff]   ;;  %v1276_v24 = vld [vmem:[#allocation7 + $0xe8] sm:$0xff]  }
  0x53   :  { %309 = vmatprep.subr.bf16.mxu0 %v1201_v29  ;;  %350 = vmatprep.subr.bf16.mxu1 %v1203_v30  ;;  %v1269_v17 = vld [vmem:[#allocation7 + $0x18] sm:$0xff]   ;;  %v1272_v20 = vld [vmem:[#allocation7 + $0xe0] sm:$0xff]   ;;  %v1277_v25 = vld [vmem:[#allocation7 + $0x28] sm:$0xff]   ;;  %p1361_p0 = pnand %p1360_p13, %p1354_p10 }
  0x54   :  { %v1270_v18 = vld [vmem:[#allocation7 + $0x98] sm:$0xff]   ;;  %v1273_v21 = vld [vmem:[#allocation7 + $0x20] sm:$0xff]   ;;  %v1278_v26 = vld [vmem:[#allocation7 + $0xa8] sm:$0xff]  }
  0x55   :  { %v1274_v22 = vld [vmem:[#allocation7 + $0xa0] sm:$0xff]   ;;  %v1279_v27 = vld [vmem:[#allocation7 + $0x70] sm:$0xff]  }
  0x56   :  { %310 = vmatpush1.bf16.msra.mxu0 %v1205_v31  ;;  %351 = vmatpush1.bf16.msra.mxu1 %v1206_v32  ;;  %v1280_v28 = vld [vmem:[#allocation7 + $0xf0] sm:$0xff]   ;;  %v1283_v31 = vld [vmem:[#allocation7 + $0x78] sm:$0xff]  }
  0x57   :  { %537 = vmatprep.subr.bf16.mxu0 %v1209_v33  ;;  %578 = vmatprep.subr.bf16.mxu1 %v1212_v34  ;;  %v1281_v29 = vld [vmem:[#allocation7 + $0x30] sm:$0xff]   ;;  %v1284_v32 = vld [vmem:[#allocation7 + $0xf8] sm:$0xff]  }
  0x58   :  { %v1282_v30 = vld [vmem:[#allocation7 + $0xb0] sm:$0xff]   ;;  %v1285_v33 = vld [vmem:[#allocation7 + $0x38] sm:$0xff]  }
  0x59   :  { %328 = vmatmul.mubr.bf16.vlgmr.msra.gmra.mrb[0].mxu0 %v102_v35  ;;  %369 = vmatmul.mubr.bf16.vlgmr.msra.gmra.mrb[0].mxu1 %v102_v35  ;;  %v1286_v34 = vld [vmem:[#allocation7 + $0xb8] sm:$0xff]  }
  0x5a   :  { %538 = vmatpush1.bf16.msra.mxu0 %v1207_v36  ;;  %579 = vmatpush1.bf16.msra.mxu1 %v1210_v37 }
  0x5b   :  { %539 = vmatprep.subr.bf16.mxu0 %v1215_v38  ;;  %580 = vmatprep.subr.bf16.mxu1 %v1218_v39 }
  0x5c   :  { %569 = vmatprep.mubr.bf16.mxu0 %v1388_v0  ;;  %610 = vmatprep.mubr.bf16.mxu1 %v1388_v0  ;;  %v1249_v0 = vld [vmem:[#allocation2 + $0xe0] ss:$16 sps:$4 sm:$0xff]  }
  0x5e   :  { %540 = vmatpush1.bf16.msra.mxu0 %v1213_v40  ;;  %581 = vmatpush1.bf16.msra.mxu1 %v1216_v41 }
  0x5f   :  { %541 = vmatprep.subr.bf16.mxu0 %v1221_v42  ;;  %582 = vmatprep.subr.bf16.mxu1 %v1224_v43  ;;  %v621_v43 = vlaneseq }
  0x62   :  { %542 = vmatpush1.bf16.msra.mxu0 %v1219_v44  ;;  %583 = vmatpush1.bf16.msra.mxu1 %v1222_v45  ;;  %v622_v44 = vshrl.u32 %v621_v43, 7 }
  0x63   :  { %543 = vmatprep.subr.bf16.mxu0 %v1227_v46  ;;  %584 = vmatprep.subr.bf16.mxu1 %v1230_v47  ;;  %v619_v47 = vld [vmem:[%s1505_s4] sm:$0xf] }
  0x64   :  { %v623_v45 = vsub.s32 0, %v622_v44  ;;  %v631_v46 = vsub.s32 2, %v622_v44 }
  0x66   :  { %544 = vmatpush1.bf16.msra.mxu0 %v1225_v48  ;;  %585 = vmatpush1.bf16.msra.mxu1 %v1228_v49  ;;  %v627_v48 = vsub.s32 1, %v622_v44  ;;  %v635_v49 = vsub.s32 3, %v622_v44 }
  0x67   :  { %545 = vmatprep.subr.bf16.mxu0 %v1233_v50  ;;  %586 = vmatprep.subr.bf16.mxu1 %v1236_v51  ;;  %v624_v50 = vrot.slane %v619_v47, %v623_v45  ;;  %v632_v51 = vrot.slane %v619_v47, %v631_v46 }
  0x6a   :  { %546 = vmatpush1.bf16.msra.mxu0 %v1231_v52  ;;  %587 = vmatpush1.bf16.msra.mxu1 %v1234_v53 }
  0x6b   :  { %547 = vmatprep.subr.bf16.mxu0 %v1239_v54  ;;  %588 = vmatprep.subr.bf16.mxu1 %v1242_v55  ;;  %v628_v54 = vrot.slane %v619_v47, %v627_v48  ;;  %v636_v55 = vrot.slane %v619_v47, %v635_v49 }
  0x6e   :  { %548 = vmatpush1.bf16.msra.mxu0 %v1237_v56  ;;  %589 = vmatpush1.bf16.msra.mxu1 %v1240_v57 }
  0x6f   :  { %549 = vmatprep.subr.bf16.mxu0 %v1245_v58  ;;  %590 = vmatprep.subr.bf16.mxu1 %v1248_v59 }
  0x72   :  { %550 = vmatpush1.bf16.msra.mxu0 %v1243_v60  ;;  %591 = vmatpush1.bf16.msra.mxu1 %v1246_v61 }
  0x73   :  { %551 = vmatprep.subr.bf16.mxu0 %v1251_v62  ;;  %592 = vmatprep.subr.bf16.mxu1 %v1254_v63 }
  0x76   :  { %552 = vmatpush1.bf16.msra.mxu0 %v1249_v0  ;;  %593 = vmatpush1.bf16.msra.mxu1 %v1252_v1 }
  0x77   :  { %1106 = vmatprep.subr.bf16.mxu0 %v1255_v3  ;;  %1128 = vmatprep.subr.bf16.mxu1 %v1256_v4 }
  0x79   :  { %570 = vmatmul.mubr.bf16.vlgmr.msra.gmra.mrb[4].mxu0 %v69_v2  ;;  %611 = vmatmul.mubr.bf16.vlgmr.msra.gmra.mrb[4].mxu1 %v69_v2 }
  0x7a   :  { %1107 = vmatpush3.bf16.msra.mxu0 %v1257_v5  ;;  %1129 = vmatpush3.bf16.msra.mxu1 %v1258_v6 }
  0x7b   :  { %1108 = vmatprep.subr.bf16.mxu0 %v1259_v7  ;;  %1130 = vmatprep.subr.bf16.mxu1 %v1260_v8 }
  0x7e   :  { %1109 = vmatpush3.bf16.msra.mxu0 %v1261_v9  ;;  %1131 = vmatpush3.bf16.msra.mxu1 %v1262_v10 }
  0x7f   :  { %1110 = vmatprep.subr.bf16.mxu0 %v1263_v11  ;;  %1132 = vmatprep.subr.bf16.mxu1 %v1264_v12  ;;  %v1073_v12 = vld [vmem:[%s1507_s6] ss:$0 sm:$0xff] }
  0x82   :  { %1111 = vmatpush3.bf16.msra.mxu0 %v1265_v13  ;;  %1133 = vmatpush3.bf16.msra.mxu1 %v1266_v14 }
  0x83   :  { %1112 = vmatprep.subr.bf16.mxu0 %v1267_v15  ;;  %1134 = vmatprep.subr.bf16.mxu1 %v1268_v16 }
  0x86   :  { %1113 = vmatpush3.bf16.msra.mxu0 %v1269_v17  ;;  %1135 = vmatpush3.bf16.msra.mxu1 %v1270_v18 }
  0x87   :  { %1114 = vmatprep.subr.bf16.mxu0 %v1271_v19  ;;  %1136 = vmatprep.subr.bf16.mxu1 %v1272_v20 }
  0x8a   :  { %1115 = vmatpush3.bf16.msra.mxu0 %v1273_v21  ;;  %1137 = vmatpush3.bf16.msra.mxu1 %v1274_v22 }
  0x8b   :  { %1116 = vmatprep.subr.bf16.mxu0 %v1275_v23  ;;  %1138 = vmatprep.subr.bf16.mxu1 %v1276_v24 }
  0x8e   :  { %1117 = vmatpush3.bf16.msra.mxu0 %v1277_v25  ;;  %1139 = vmatpush3.bf16.msra.mxu1 %v1278_v26 }
  0x8f   :  { %1118 = vmatprep.subr.bf16.mxu0 %v1279_v27  ;;  %1140 = vmatprep.subr.bf16.mxu1 %v1280_v28 }
  0x92   :  { %1119 = vmatpush3.bf16.msra.mxu0 %v1281_v29  ;;  %1141 = vmatpush3.bf16.msra.mxu1 %v1282_v30 }
  0x93   :  { %1120 = vmatprep.subr.bf16.mxu0 %v1283_v31  ;;  %1142 = vmatprep.subr.bf16.mxu1 %v1284_v32 }
  0x96   :  { %1121 = vmatpush3.bf16.msra.mxu0 %v1285_v33  ;;  %1143 = vmatpush3.bf16.msra.mxu1 %v1286_v34 }
 0x12c   :  { %v329_v35 = vpop.f32.mrb[0].mxu0  ;;  %v370_v36 = vpop.f32.mrb[0].mxu1 }
 0x12d   :  { %v331_v37 = vpop.f32.mrb[1].mxu0  ;;  %v372_v38 = vpop.f32.mrb[1].mxu1 }
 0x12e   :  { %v333_v39 = vpop.f32.mrb[2].mxu0  ;;  %v374_v40 = vpop.f32.mrb[2].mxu1 }
 0x12f   :  { %v334_v41 = vpop.f32.mrb[3].mxu0  ;;  %v375_v42 = vpop.f32.mrb[3].mxu1 }
 0x14c   :  { %v571_v52 = vpop.f32.mrb[4].mxu0  ;;  %v612_v53 = vpop.f32.mrb[4].mxu1 }
 0x14d   :  { %v572_v56 = vadd.f32 %v571_v52, %v329_v35  ;;  %v613_v57 = vadd.f32 %v612_v53, %v370_v36  ;;  %v573_v58 = vpop.f32.mrb[5].mxu0  ;;  %v614_v59 = vpop.f32.mrb[5].mxu1 }
 0x14e   :  { %v574_v60 = vadd.f32 %v573_v58, %v331_v37  ;;  %v615_v61 = vadd.f32 %v614_v59, %v372_v38  ;;  %v575_v62 = vpop.f32.mrb[6].mxu0  ;;  %v616_v63 = vpop.f32.mrb[6].mxu1 }
 0x14f   :  { %v641_v0 = vadd.f32 %v624_v50, %v572_v56  ;;  %v643_v1 = vadd.f32 %v632_v51, %v613_v57  ;;  %v576_v2 = vpop.f32.mrb[7].mxu0  ;;  %v617_v3 = vpop.f32.mrb[7].mxu1 }
 0x150   :  { %v642_v4 = vadd.f32 %v628_v54, %v574_v60  ;;  %v644_v5 = vadd.f32 %v636_v55, %v615_v61 }
 0x151   :  { %v645_v8 = vpack.c.bf16 %v641_v0, %v641_v0  ;;  %v647_v9 = vpack.c.bf16 %v643_v1, %v643_v1 }
 0x152   :  { %v646_v6 = vpack.c.bf16 %v642_v4, %v642_v4  ;;  %v648_v7 = vpack.c.bf16 %v644_v5, %v644_v5 }
 0x154   :  { %944 = vmatprep.mubr.bf16.mxu0 %v646_v6  ;;  %984 = vmatprep.mubr.bf16.mxu1 %v648_v7 }
 0x155   :  { %945 = vmatmul.mubr.bf16.vlgmr.msra.gmra.mrb[8].mxu0 %v645_v8  ;;  %985 = vmatmul.mubr.bf16.vlgmr.msra.gmra.mrb[8].mxu1 %v647_v9 }
 0x228   :  { %v1122_v10 = vpop.f32.mrb[8].mxu0  ;;  %v1144_v11 = vpop.f32.mrb[8].mxu1 }
 0x229   :  { %v1123_v13 = vpop.f32.mrb[9].mxu0  ;;  %v1145_v14 = vpop.f32.mrb[9].mxu1 }
 0x22a   :  { %v1124_v15 = vadd.f32 %v1123_v13, %v1122_v10  ;;  %v1146_v16 = vadd.f32 %v1145_v14, %v1144_v11  ;;  %v1125_v17 = vpop.f32.mrb[10].mxu0  ;;  %v1147_v18 = vpop.f32.mrb[10].mxu1 }
 0x22b   :  { %v1126_v19 = vpop.f32.mrb[11].mxu0  ;;  %v1148_v20 = vpop.f32.mrb[11].mxu1 }
 0x22c   :  { %v947_v21 = vadd.f32 %v1124_v15, %v1073_v12 }
 0x22e   :  { %v987_v22 = vadd.f32 %v1146_v16, %v947_v21 }
 0x230   :  { %992 = vst [vmem:[#allocation8] sm:$0xff] %v987_v22 }
 0x231   :  { %1364 = shalt.err (!%p1361_p0)
}
 0x232   :  { %s1365_s24 = scalar_lea.hbm %s1508_s7, 128 }
 0x233   :  { %p1366_p1 = scmp.ne.s32.totalorder %s1508_s7, %s1365_s24  ;;  %p1369_p2 = scmp.lt.u32.totalorder %s1365_s24, %s1508_s7 }
 0x235   :  { %p1371_p3 = pnand %p1369_p2, %p1366_p1 }
 0x237   :  { %1374 = shalt.err (!%p1371_p3)
}
 0x238   :  { %1002 = dma.vmem_to_hbm [thread:$0]  %s1000_s21, 128, %s1508_s7, [#allocation4]  }
 0x239   :  { %1379 = dma.done.wait [#allocation4], 128  }
 0x23a   :  { %1380 = vsyncadd [#allocation4], 4294967168 }
 0x23b   :  { %1006 = vsyncpa [#allocation3], 1 }
 0x23c   :  { %1007 = vsyncpa [#allocation6], 1 }
 0x23d   :  { %1008 = vsyncpa [#allocation4], 1 }

</bundles_post_ra>
